<compile_context>
chip_gen: v6e
topology: v6e:2x2x1
jax: 0.10.0
libtpu: 0.0.40
codegen_flags: <defaults>
</compile_context>

<pallas_src>
import functools

import jax
import jax.numpy as jnp
from jax.experimental import pallas as pl
from jax.experimental.pallas import tpu as pltpu

_LANE_TILE = 4096  # batch elements per grid step when tiling (multiple of 128)


def _focal_loss_kernel(logits_ref, targets_ref, alpha_ref, out_ref, acc_ref, *,
                       gamma, reduction, total_b, block_b, needs_mask, inv_n):
    i = pl.program_id(0)

    logits = logits_ref[...].astype(jnp.float32)      # (C, TB)
    targets = targets_ref[...]                        # (1, TB) int32
    alpha = alpha_ref[...].astype(jnp.float32)        # (C, 1)
    C, TB = logits.shape

    # Numerically-stable log-softmax pieces via log-sum-exp (no probs array).
    m = jnp.max(logits, axis=0, keepdims=True)                        # (1, TB)
    lse = jnp.log(jnp.sum(jnp.exp(logits - m), axis=0, keepdims=True))  # (1, TB)

    # one-hot(targets) via 2-D iota over the (small) class/sublane axis.
    class_ids = jax.lax.broadcasted_iota(jnp.int32, (C, TB), 0)
    one_hot = (class_ids == targets).astype(jnp.float32)              # (C, TB)

    # Gather the true-class logit and the per-sample alpha weight.
    x_t = jnp.sum(logits * one_hot, axis=0, keepdims=True)            # (1, TB)
    alpha_t = jnp.sum(alpha * one_hot, axis=0, keepdims=True)         # (1, TB)

    log_pt = x_t - m - lse                                            # <= 0, finite
    pt = jnp.exp(log_pt)
    omp = 1.0 - pt

    # Integer gamma -> explicit multiplies (avoids exp(gamma*log(x)) on EUP).
    g = float(gamma)
    if g == int(g) and int(g) >= 0:
        ig = int(g)
        if ig == 0:
            fw = jnp.ones_like(omp)
        else:
            fw = omp
            for _ in range(ig - 1):
                fw = fw * omp
    else:
        fw = omp ** g

    loss = -(alpha_t * fw) * log_pt                                   # (1, TB)

    if needs_mask:  # zero out padded batch lanes in the last block
        col = jax.lax.broadcasted_iota(jnp.int32, (1, TB), 1) + i * block_b
        loss = jnp.where(col < total_b, loss, 0.0)

    if reduction == "none":
        out_ref[...] = loss
    else:
        @pl.when(i == 0)
        def _():
            acc_ref[...] = jnp.zeros_like(acc_ref)

        acc_ref[...] += jnp.sum(loss, axis=1, keepdims=True)          # (1, 1)

        @pl.when(i == pl.num_programs(0) - 1)
        def _():
            if reduction == "mean":
                out_ref[...] = acc_ref[...] * jnp.float32(inv_n)
            else:  # 'sum'
                out_ref[...] = acc_ref[...]


def multi_focal_loss(logits, targets, num_class, alpha=None, gamma=2.0,
                     reduction="mean"):
    """JAX/Pallas equivalent of MultiFocalLoss.forward ('mean'/'sum'/'none')."""
    B, C = logits.shape
    assert C == num_class
    if reduction not in ("mean", "sum", "none"):
        raise ValueError(f"unknown reduction: {reduction!r}")

    # Lane-dense layout: classes on sublanes, batch on lanes.  Keep the input
    # dtype (cast to f32 inside the kernel, hidden under the DMA).
    logits_t = jnp.transpose(logits)                       # (C, B)
    targets_row = targets.astype(jnp.int32).reshape(1, B)  # (1, B)
    if alpha is None:
        alpha_col = jnp.ones((C, 1), dtype=jnp.float32)
    else:
        alpha_col = jnp.asarray(alpha, dtype=jnp.float32).reshape(C, 1)

    # Tile over batch.  Single block (no padding) when B fits one tile.
    if B <= _LANE_TILE:
        tb, nb, bp = B, 1, B
    else:
        tb = _LANE_TILE
        nb = -(-B // tb)
        bp = tb * nb
    if bp != B:
        logits_t = jnp.pad(logits_t, ((0, 0), (0, bp - B)))
        targets_row = jnp.pad(targets_row, ((0, 0), (0, bp - B)))

    kernel = functools.partial(
        _focal_loss_kernel, gamma=float(gamma), reduction=reduction,
        total_b=B, block_b=tb, needs_mask=(bp != B), inv_n=1.0 / float(B))

    if reduction == "none":
        out_shape = jax.ShapeDtypeStruct((1, bp), jnp.float32)
        out_spec = pl.BlockSpec((1, tb), lambda i: (0, i))
        semantics = ("parallel",)
    else:
        out_shape = jax.ShapeDtypeStruct((1, 1), jnp.float32)
        out_spec = pl.BlockSpec((1, 1), lambda i: (0, 0))
        semantics = ("arbitrary",)  # reduction axis: accumulator is resident

    # TODO(synk): on v7x the batch-tile axis could be split across the two
    # TensorCores ('parallel' leading axis + per-core partial sums combined in
    # a tiny second pass) for ~2x on very large B.
    out = pl.pallas_call(
        kernel,
        out_shape=out_shape,
        grid_spec=pltpu.PrefetchScalarGridSpec(
            num_scalar_prefetch=0,
            grid=(nb,),
            in_specs=[
                pl.BlockSpec((C, tb), lambda i: (0, i)),   # logits (C, B)
                pl.BlockSpec((1, tb), lambda i: (0, i)),   # targets (1, B)
                pl.BlockSpec((C, 1), lambda i: (0, 0)),    # alpha, resident
            ],
            out_specs=out_spec,
            scratch_shapes=[pltpu.VMEM((1, 1), jnp.float32)],
        ),
        compiler_params=pltpu.CompilerParams(
            dimension_semantics=semantics,
            vmem_limit_bytes=32 * 1024 * 1024,
        ),
    )(logits_t, targets_row, alpha_col)

    if reduction == "none":
        return out[0, :B]
    return out[0, 0]


def _reference(logits, targets, num_class, alpha=None, gamma=2.0,
               reduction="mean"):
    probs = jax.nn.softmax(logits.astype(jnp.float32), axis=1)
    one_hot = jax.nn.one_hot(targets, num_class, dtype=jnp.float32)
    pt = jnp.sum(probs * one_hot, axis=1)
    loss = -((1.0 - pt) ** gamma) * jnp.log(pt)
    if alpha is not None:
        alpha_t = jnp.sum(jnp.asarray(alpha, jnp.float32) * one_hot, axis=1)
        loss = loss * alpha_t
    if reduction == "mean":
        return jnp.mean(loss)
    if reduction == "sum":
        return jnp.sum(loss)
    return loss


if __name__ == "__main__":
    num_class = 4
    batch = 8
    gamma = 2.0
    alpha = [0.1, 0.2, 0.3, 0.4]

    key = jax.random.PRNGKey(0)
    k1, k2 = jax.random.split(key)
    logits = jax.random.normal(k1, (batch, num_class), dtype=jnp.float32)
    targets = jax.random.randint(k2, (batch,), 0, num_class, dtype=jnp.int32)

    for red in ("mean", "sum", "none"):
        out = multi_focal_loss(logits, targets, num_class, alpha=alpha,
                               gamma=gamma, reduction=red)
        out = jax.block_until_ready(out)
        ref = _reference(logits, targets, num_class, alpha=alpha, gamma=gamma,
                         reduction=red)
        assert jnp.allclose(out, ref, atol=1e-5, rtol=1e-5), (red, out, ref)

    # alpha=None path (wrapper substitutes unit class weights)
    out = multi_focal_loss(logits, targets, num_class, alpha=None, gamma=gamma)
    out = jax.block_until_ready(out)
    ref = _reference(logits, targets, num_class, alpha=None, gamma=gamma)
    assert jnp.allclose(out, ref, atol=1e-5, rtol=1e-5), (out, ref)

    print("KERNEL_OK")
</pallas_src>

<mosaic_0001>
module attributes {stable_mosaic.version = 11 : i64} {
  func.func @_focal_loss_kernel(%arg0: i32, %arg1: memref<4x8xf32, #tpu.memory_space<vmem>>, %arg2: memref<1x8xi32, #tpu.memory_space<vmem>>, %arg3: memref<4x1xf32, #tpu.memory_space<vmem>>, %arg4: memref<1x1xf32, #tpu.memory_space<vmem>>, %arg5: memref<1x1xf32, #tpu.memory_space<vmem>>) attributes {dimension_semantics = [#tpu.dimension_semantics<arbitrary>], iteration_bounds = array<i64: 1>, scalar_prefetch = 0 : i64, scratch_operands = 1 : i64, tpu.core_type = #tpu.core_type<tc>, window_params = [{transform_indices = @transform_0, window_bounds = array<i64: 4, 8>}, {transform_indices = @transform_1, window_bounds = array<i64: 1, 8>}, {pipeline_mode = #tpu.pipeline_mode<synchronous>, transform_indices = @transform_2, window_bounds = array<i64: 4, 1>}, {pipeline_mode = #tpu.pipeline_mode<synchronous>, transform_indices = @transform_3, window_bounds = array<i64: 1, 1>}]} {
    %c0 = arith.constant 0 : index
    %c0_0 = arith.constant 0 : index
    %0 = vector.load %arg1[%c0, %c0_0] : memref<4x8xf32, #tpu.memory_space<vmem>>, vector<4x8xf32>
    %c0_1 = arith.constant 0 : index
    %c0_2 = arith.constant 0 : index
    %1 = vector.load %arg2[%c0_1, %c0_2] : memref<1x8xi32, #tpu.memory_space<vmem>>, vector<1x8xi32>
    %c0_3 = arith.constant 0 : index
    %c0_4 = arith.constant 0 : index
    %2 = vector.load %arg3[%c0_3, %c0_4] : memref<4x1xf32, #tpu.memory_space<vmem>>, vector<4x1xf32>
    %cst = arith.constant dense<0xFF800000> : vector<8xf32>
    %3 = vector.multi_reduction <maximumf>, %0, %cst [0] : vector<4x8xf32> to vector<8xf32>
    %4 = vector.shape_cast %3 : vector<8xf32> to vector<1x8xf32>
    %5 = vector.broadcast %4 : vector<1x8xf32> to vector<4x8xf32>
    %6 = arith.subf %0, %5 : vector<4x8xf32>
    %7 = math.exp %6 : vector<4x8xf32>
    %cst_5 = arith.constant dense<0.000000e+00> : vector<8xf32>
    %8 = vector.multi_reduction <add>, %7, %cst_5 [0] : vector<4x8xf32> to vector<8xf32>
    %9 = vector.shape_cast %8 : vector<8xf32> to vector<1x8xf32>
    %10 = math.log %9 : vector<1x8xf32>
    %11 = tpu.iota {dimensions = array<i32: 0>} : vector<4x8xi32>
    %12 = vector.broadcast %1 : vector<1x8xi32> to vector<4x8xi32>
    %13 = arith.cmpi eq, %11, %12 : vector<4x8xi32>
    %14 = arith.extui %13 : vector<4x8xi1> to vector<4x8xi32>
    %15 = arith.sitofp %14 : vector<4x8xi32> to vector<4x8xf32>
    %16 = arith.mulf %0, %15 : vector<4x8xf32>
    %cst_6 = arith.constant dense<0.000000e+00> : vector<8xf32>
    %17 = vector.multi_reduction <add>, %16, %cst_6 [0] : vector<4x8xf32> to vector<8xf32>
    %18 = vector.shape_cast %17 : vector<8xf32> to vector<1x8xf32>
    %19 = vector.broadcast %2 : vector<4x1xf32> to vector<4x8xf32>
    %20 = arith.mulf %19, %15 : vector<4x8xf32>
    %cst_7 = arith.constant dense<0.000000e+00> : vector<8xf32>
    %21 = vector.multi_reduction <add>, %20, %cst_7 [0] : vector<4x8xf32> to vector<8xf32>
    %22 = vector.shape_cast %21 : vector<8xf32> to vector<1x8xf32>
    %23 = arith.subf %18, %4 : vector<1x8xf32>
    %24 = arith.subf %23, %10 : vector<1x8xf32>
    %25 = math.exp %24 : vector<1x8xf32>
    %cst_8 = arith.constant 1.000000e+00 : f32
    %26 = vector.broadcast %cst_8 : f32 to vector<1x8xf32>
    %27 = arith.subf %26, %25 : vector<1x8xf32>
    %28 = arith.mulf %27, %27 : vector<1x8xf32>
    %29 = arith.mulf %22, %28 : vector<1x8xf32>
    %cst_9 = arith.constant 0.000000e+00 : f32
    %30 = vector.broadcast %cst_9 : f32 to vector<1x8xf32>
    %31 = arith.subf %30, %29 : vector<1x8xf32>
    %32 = arith.mulf %31, %24 : vector<1x8xf32>
    %c0_i32 = arith.constant 0 : i32
    %33 = arith.cmpi eq, %arg0, %c0_i32 : i32
    %34 = arith.extui %33 : i1 to i32
    %c0_i32_10 = arith.constant 0 : i32
    %35 = arith.cmpi ne, %34, %c0_i32_10 : i32
    scf.if %35 {
      %cst_18 = arith.constant 0.000000e+00 : f32
      %44 = vector.broadcast %cst_18 : f32 to vector<1x1xf32>
      %c0_19 = arith.constant 0 : index
      %c0_20 = arith.constant 0 : index
      %45 = vector.load %arg5[%c0_19, %c0_20] : memref<1x1xf32, #tpu.memory_space<vmem>>, vector<1x1xf32>
      tpu.vector_store %arg5[%c0_19, %c0_20], %44 {strides = array<i32>} : memref<1x1xf32, #tpu.memory_space<vmem>>, vector<1x1xf32>,
    } else {
    }
    %c0_11 = arith.constant 0 : index
    %c0_12 = arith.constant 0 : index
    %36 = vector.load %arg5[%c0_11, %c0_12] : memref<1x1xf32, #tpu.memory_space<vmem>>, vector<1x1xf32>
    %cst_13 = arith.constant dense<0.000000e+00> : vector<1xf32>
    %37 = vector.multi_reduction <add>, %32, %cst_13 [1] : vector<1x8xf32> to vector<1xf32>
    %38 = vector.shape_cast %37 : vector<1xf32> to vector<1x1xf32>
    %39 = arith.addf %36, %38 : vector<1x1xf32>
    %c0_14 = arith.constant 0 : index
    %c0_15 = arith.constant 0 : index
    %40 = vector.load %arg5[%c0_14, %c0_15] : memref<1x1xf32, #tpu.memory_space<vmem>>, vector<1x1xf32>
    tpu.vector_store %arg5[%c0_14, %c0_15], %39 {strides = array<i32>} : memref<1x1xf32, #tpu.memory_space<vmem>>, vector<1x1xf32>,
    %c0_i32_16 = arith.constant 0 : i32
    %41 = arith.cmpi eq, %arg0, %c0_i32_16 : i32
    %42 = arith.extui %41 : i1 to i32
    %c0_i32_17 = arith.constant 0 : i32
    %43 = arith.cmpi ne, %42, %c0_i32_17 : i32
    scf.if %43 {
      %c0_18 = arith.constant 0 : index
      %c0_19 = arith.constant 0 : index
      %44 = vector.load %arg5[%c0_18, %c0_19] : memref<1x1xf32, #tpu.memory_space<vmem>>, vector<1x1xf32>
      %cst_20 = arith.constant 1.250000e-01 : f32
      %45 = vector.broadcast %cst_20 : f32 to vector<1x1xf32>
      %46 = arith.mulf %44, %45 : vector<1x1xf32>
      %c0_21 = arith.constant 0 : index
      %c0_22 = arith.constant 0 : index
      %47 = vector.load %arg4[%c0_21, %c0_22] : memref<1x1xf32, #tpu.memory_space<vmem>>, vector<1x1xf32>
      tpu.vector_store %arg4[%c0_21, %c0_22], %46 {strides = array<i32>} : memref<1x1xf32, #tpu.memory_space<vmem>>, vector<1x1xf32>,
    } else {
    }
    return
  }
  func.func @transform_0(%arg0: i32) -> (i32, i32) {
    %c0_i32 = arith.constant 0 : i32
    %c0_i32_0 = arith.constant 0 : i32
    return %c0_i32, %arg0 : i32, i32
  }
  func.func @transform_1(%arg0: i32) -> (i32, i32) {
    %c0_i32 = arith.constant 0 : i32
    %c0_i32_0 = arith.constant 0 : i32
    return %c0_i32, %arg0 : i32, i32
  }
  func.func @transform_2(%arg0: i32) -> (i32, i32) {
    %c0_i32 = arith.constant 0 : i32
    %c0_i32_0 = arith.constant 0 : i32
    %c0_i32_1 = arith.constant 0 : i32
    return %c0_i32, %c0_i32_0 : i32, i32
  }
  func.func @transform_3(%arg0: i32) -> (i32, i32) {
    %c0_i32 = arith.constant 0 : i32
    %c0_i32_0 = arith.constant 0 : i32
    %c0_i32_1 = arith.constant 0 : i32
    return %c0_i32, %c0_i32_0 : i32, i32
  }
}

</mosaic_0001>

<bundles_post_ra>
// kernel: tpu_custom_call.1
= control target key start
LH: loop header
LB: loop body
LE: loop exit
PB: predicated region body
PF: predicated region fallthrough
CT: control target
= control target key end

     0   :  { %v145_v1 = vmov 0   ;;  %vm81_vm0 = vcmask 0   ;;  %v146_v2 = vmov 0.0   ;;  %s187_s0 = inlined_call_operand.vmem [shape: f32[4,8], index: 0, kind: input, shape index: {}]   ;;  %s188_s1 = inlined_call_operand.vmem [shape: s32[1,8], index: 1, kind: input, shape index: {}]   ;;  %s189_s2 = inlined_call_operand.vmem [shape: f32[4,1], index: 2, kind: input, shape index: {}]   ;;  %s190_s3 = inlined_call_operand.hbm [shape: f32[1,1], index: 3, kind: output, shape index: {}]  }
   0x1   :  { %v17_v0 = vld [vmem:[%s189_s2] sm:$0xf]  ;;  %116 = vset.pattern.permute.xlu0 %v145_v1  ;;  %82 = vst.msk [vmem:[#allocation2] sm:$0x1] %vm81_vm0, %v146_v2 }
   0x2   :  { %57 = vperm.xlu0 %116, %v17_v0  }
   0x3   :  { %8 = vsyncpa [#allocation4], 0  ;;  %vm18_vm1 = vcmask 60416   ;;  %v15_v3 = vld [vmem:[%s187_s0] sm:$0xf]  ;;  %v38_v14 = vlaneseq  ;;  %vm84_vm3 = vcmask 64512  }
   0x4   :  { %v19_v4 = vsel %vm18_vm1, %v15_v3, -inf  ;;  %v111_v17 = vld [vmem:[%s188_s1] ss:$0 sm:$0xff]  ;;  %s147_s0 = smov [#allocation3]  }
   0x5   :  { %v20_v5 = vrot.slane %v19_v4, 4  ;;  %v39_v16 = vshrl.u32 %v38_v14, 7  ;;  %s103_s1 = sshll.u32 %s147_s0, 4  ;;  %s104_s1 = int_to_ptr.vmem [resolvable:$true] %s103_s1 }
   0x6   :  { %s123_s17 = scalar_lea.vmem %s104_s1, 16  ;;  %s127_s18 = scalar_lea.vmem %s104_s1, 32 }
   0x7   :  { %v21_v6 = vmax.f32 %v19_v4, %v20_v5  ;;  %vm44_vm2 = vcmp.eq.s32.totalorder %v39_v16, %v111_v17  ;;  %p124_p0 = scmp.ne.s32.totalorder %s104_s1, %s123_s17  ;;  %p128_p1 = scmp.lt.s32.totalorder %s104_s1, %s104_s1 }
   0x8   :  { %v112_v20 = vsel %vm44_vm2, 1.0, %v146_v2  ;;  %v83_v54 = vld [vmem:[#allocation2] sm:$0x1]  ;;  %p129_p2 = scmp.lt.s32.totalorder %s127_s18, %s123_s17 }
   0x9   :  { %v22_v7 = vrot.slane %v21_v6, 2  ;;  %v47_v22 = vmul.f32 %v112_v20, %v15_v3 }
   0xa   :  { %p130_p3 = por %p129_p2, %p128_p1 }
   0xb   :  { %v23_v8 = vmax.f32 %v21_v6, %v22_v7  ;;  %v48_v24 = vsel %vm18_vm1, %v47_v22, 0.0 }
   0xc   :  { %v49_v25 = vrot.slane %v48_v24, 4  ;;  %p131_p4 = pnand %p130_p3, %p124_p0 }
   0xd   :  { %v24_v9 = vrot.slane %v23_v8, 1 }
   0xe   :  { %v50_v27 = vadd.f32 %v49_v25, %v48_v24 }
   0xf   :  { %v25_v10 = vmax.f32 %v23_v8, %v24_v9 }
  0x10   :  { %v51_v29 = vrot.slane %v50_v27, 2 }
  0x11   :  { %v26_v11 = vsub.f32 %v15_v3, %v25_v10 }
  0x12   :  { %v52_v30 = vadd.f32 %v51_v29, %v50_v27 }
  0x13   :  { %v27_v12 = vmul.f32 1.442695, %v26_v11 }
  0x14   :  { %v53_v31 = vrot.slane %v52_v30, 1 }
  0x15   :  { %117 = vpow2.f32 %v27_v12 }
  0x16   :  { %v54_v32 = vadd.f32 %v53_v31, %v52_v30 }
  0x18   :  { %v68_v35 = vsub.f32 %v54_v32, %v25_v10 }
  0x22   :  { %v118_v13 = vpop.eup %117 }
  0x23   :  { %v29_v15 = vsel %vm18_vm1, %v118_v13, 0.0 }
  0x24   :  { %v30_v18 = vrot.slane %v29_v15, 4 }
  0x26   :  { %v31_v19 = vadd.f32 %v30_v18, %v29_v15 }
  0x28   :  { %v32_v21 = vrot.slane %v31_v19, 2 }
  0x2a   :  { %v33_v23 = vadd.f32 %v32_v21, %v31_v19 }
  0x2c   :  { %v34_v26 = vrot.slane %v33_v23, 1 }
  0x2e   :  { %v35_v28 = vadd.f32 %v34_v26, %v33_v23 }
  0x30   :  { %119 = vlog2.f32 %v35_v28 }
  0x3d   :  { %v120_v33 = vpop.eup %119 }
  0x3e   :  { %v37_v34 = vmul.f32 0.6931472, %v120_v33 }
  0x40   :  { %v69_v36 = vsub.f32 %v68_v35, %v37_v34 }
  0x42   :  { %v70_v37 = vmul.f32 1.442695, %v69_v36 }
  0x44   :  { %121 = vpow2.f32 %v70_v37 }
  0x51   :  { %v122_v42 = vpop.eup %121 }
  0x52   :  { %v72_v45 = vsub.f32 1.0, %v122_v42 }
  0x54   :  { %v73_v48 = vmul.f32 %v72_v45, %v72_v45 }
  0x7d   :  { %v58_v38 = vpop.permute.xlu0 %57 }
  0x7e   :  { %v60_v39 = vmul.f32 %v112_v20, %v58_v38 }
  0x80   :  { %v61_v40 = vsel %vm18_vm1, %v60_v39, 0.0 }
  0x81   :  { %v62_v41 = vrot.slane %v61_v40, 4 }
  0x83   :  { %v63_v43 = vadd.f32 %v62_v41, %v61_v40 }
  0x85   :  { %v64_v44 = vrot.slane %v63_v43, 2 }
  0x87   :  { %v65_v46 = vadd.f32 %v64_v44, %v63_v43 }
  0x89   :  { %v66_v47 = vrot.slane %v65_v46, 1 }
  0x8b   :  { %v67_v49 = vadd.f32 %v66_v47, %v65_v46 }
  0x8d   :  { %v74_v50 = vmul.f32 %v73_v48, %v67_v49 }
  0x8f   :  { %v75_v51 = vsub.f32 0.0, %v74_v50 }
  0x91   :  { %v76_v52 = vmul.f32 %v75_v51, %v69_v36 }
  0x93   :  { %v85_v53 = vsel %vm84_vm3, %v76_v52, 0.0 }
  0x94   :  { %86 = vadd.xlane.f32.xlu0 %v85_v53 }
 0x11d   :  { %v87_v55 = vpop.xlane.xlu0 %86 }
 0x11e   :  { %v88_v56 = vadd.f32 %v87_v55, %v83_v54 }
 0x120   :  { %90 = vst.msk [vmem:[#allocation2] sm:$0x1] %vm81_vm0, %v88_v56 }
 0x127   :  { %v94_v57 = vld [vmem:[#allocation2] sm:$0x1] }
 0x128   :  { %v95_v58 = vmul.f32 0.125, %v94_v57 }
 0x12a   :  { %96 = vst.msk [vmem:[#allocation3] sm:$0x1] %vm81_vm0, %v95_v58 }
 0x12b   :  { %134 = shalt.err (!%p131_p4)
}
 0x12c   :  { %106 = dma.vmem_to_hbm [thread:$0]  %s104_s1, 16, %s190_s3, [#allocation4]  }
 0x12d   :  { %143 = dma.done.wait [#allocation4], 16  }
 0x12e   :  { %144 = vsyncadd [#allocation4], 4294967280 }
 0x12f   :  { %110 = vsyncpa [#allocation4], 1 }

</bundles_post_ra>
